<compile_context>
chip_gen: v7x
topology: tpu7x:2x2x1
jax: 0.10.0
libtpu: 0.0.40
codegen_flags: <defaults>
</compile_context>

<pallas_src>
import functools

import jax
import jax.numpy as jnp
from jax.experimental import pallas as pl
from jax.experimental.pallas import tpu as pltpu


def _round_up(x, m):
    return (x + m - 1) // m * m


def rnn_classify_kernel(ids_ref, slab_ref, out_ref, *, v_pad, d, l, b_pad):
    # ids_ref : (L*B_pad, 1) int32  time-major token ids (padded batch cols hold id 0)
    # slab_ref: (V_pad + 2*D + 8, D) f32 packed parameters:
    #             rows [0, V_pad)             emb_proj = Emb @ W_ih^T + (b_ih + b_hh)
    #             rows [V_pad, V_pad+D)       W_hh^T
    #             rows [V_pad+D, V_pad+2D)    W_classify^T  (cols >= C zero-padded)
    #             row  V_pad+2D               b_classify    (cols >= C zero-padded)
    # out_ref : (B_pad, D) f32 logits; only [:B, :C] is meaningful.
    lb = l * b_pad

    # Fused embedding-gather + input projection (+ both RNN biases) as ONE MXU call:
    #   one_hot(ids) @ emb_proj == Emb[ids] @ W_ih^T + b_ih + b_hh   for all timesteps.
    # TODO(synk): at production V (>~4k) keep emb_proj in HBM (memory_space=pl.ANY),
    # prefetch ids via num_scalar_prefetch and DMA-gather only the L*B rows needed,
    # replacing this one-hot matmul.
    ids = ids_ref[...]                                                   # (L*B_pad, 1)
    onehot = (ids == jax.lax.broadcasted_iota(jnp.int32, (lb, v_pad), 1)
              ).astype(jnp.float32)                                      # (L*B_pad, V_pad)
    xproj = jnp.dot(onehot, slab_ref[0:v_pad, :],
                    preferred_element_type=jnp.float32)                  # (L*B_pad, D)

    whh = slab_ref[v_pad:v_pad + d, :]                                   # (D, D)

    # Serial tanh-RNN recurrence, fully unrolled (static L) in this single invocation.
    # h_0 = 0  =>  h_1 = tanh(xproj[0:B_pad])  (the zero @ W_hh matmul is skipped).
    h = jnp.tanh(xproj[0:b_pad, :])
    for t in range(1, l):  # static trip count -> same as fori_loop(..., unroll=True)
        x_t = xproj[t * b_pad:(t + 1) * b_pad, :]   # 8-sublane-aligned free view
        h = jnp.tanh(x_t + jnp.dot(h, whh, preferred_element_type=jnp.float32))

    wc = slab_ref[v_pad + d:v_pad + 2 * d, :]                            # (D, D)
    bc = slab_ref[v_pad + 2 * d:v_pad + 2 * d + 1, :]                    # (1, D)
    out_ref[...] = (jnp.dot(h, wc, preferred_element_type=jnp.float32)
                    + bc).astype(out_ref.dtype)


def pack_params(params):
    """One-time (init / checkpoint-load) parameter precompute + packing.

    Folds the input projection + RNN biases into the embedding table and
    concatenates all parameters into one sublane-aligned f32 slab that the
    kernel consumes as a single VMEM block (single parameter DMA per call).
    """
    emb = params["embedding"]                  # (V, D), row 0 zeroed (padding_idx=0)
    V, D = emb.shape
    C = params["w_c_t"].shape[1]
    assert C <= D, "pack_params assumes num_classes <= vector_dim"
    # TODO(synk): if C > D, widen the slab to max(D, C) columns.
    V_pad = _round_up(V, 8)

    b_rnn = params["b_ih"] + params["b_hh"]    # (1, D) pre-summed RNN biases
    emb_proj = emb @ params["w_ih_t"] + b_rnn  # (V, D) == Emb[v] @ W_ih^T + b_ih + b_hh
    emb_proj = jnp.pad(emb_proj, ((0, V_pad - V), (0, 0)))
    wc_pad = jnp.pad(params["w_c_t"], ((0, 0), (0, D - C)))              # (D, D)
    bc_pad = jnp.pad(params["b_c"], ((0, 7), (0, D - C)))                # (8, D), row 0 real
    slab = jnp.concatenate([emb_proj, params["w_hh_t"], wc_pad, bc_pad], axis=0)
    return slab.astype(jnp.float32)            # (V_pad + 2D + 8, D)


def torch_model_forward(x_ids, slab, num_classes):
    """x_ids: (B, L) int token ids; slab: packed params. Returns (B, num_classes)."""
    B, L = x_ids.shape
    D = slab.shape[1]
    V_pad = slab.shape[0] - 2 * D - 8
    B_pad = _round_up(B, 8)

    # Time-major, batch-padded ids (pad columns with token 0). The padded batch rows
    # compute throwaway values; that is cheaper than misaligned per-step slices.
    ids_tm = jnp.zeros((L, B_pad), jnp.int32).at[:, :B].set(x_ids.astype(jnp.int32).T)
    ids_tm = ids_tm.reshape(L * B_pad, 1)

    kernel = functools.partial(rnn_classify_kernel,
                               v_pad=V_pad, d=D, l=L, b_pad=B_pad)

    # TODO(synk): when batching many sequences on v7x, add a leading size-2 "parallel"
    # grid axis splitting the batch across the two TensorCores.
    # TODO(synk): at production D on v5e, set vmem_limit_bytes and split the slab /
    # mark the weight spec pl.Buffered(1) to fit the 16 MiB scoped-VMEM default.
    out = pl.pallas_call(
        kernel,
        out_shape=jax.ShapeDtypeStruct((B_pad, D), jnp.float32),
        in_specs=[
            pl.BlockSpec(memory_space=pltpu.MemorySpace.VMEM),  # ids (time-major)
            pl.BlockSpec(memory_space=pltpu.MemorySpace.VMEM),  # packed parameter slab
        ],
        out_specs=pl.BlockSpec(memory_space=pltpu.MemorySpace.VMEM),
    )(ids_tm, slab)
    return out[:B, :num_classes]


def init_params(key, vocab_size, vector_dim, sentence_length):
    ks = jax.random.split(key, 7)
    D = vector_dim
    C = sentence_length + 1
    scale = 0.1
    emb = scale * jax.random.normal(ks[0], (vocab_size, D), jnp.float32)
    emb = emb.at[0].set(0.0)  # padding_idx=0
    w_ih = scale * jax.random.normal(ks[1], (D, D), jnp.float32)   # torch: (hidden, input)
    w_hh = scale * jax.random.normal(ks[2], (D, D), jnp.float32)
    b_ih = scale * jax.random.normal(ks[3], (D,), jnp.float32)
    b_hh = scale * jax.random.normal(ks[4], (D,), jnp.float32)
    w_c = scale * jax.random.normal(ks[5], (C, D), jnp.float32)    # torch Linear: (out, in)
    b_c = scale * jax.random.normal(ks[6], (C,), jnp.float32)
    return {
        "embedding": emb,
        "w_ih_t": w_ih.T,
        "w_hh_t": w_hh.T,
        "b_ih": b_ih.reshape(1, D),
        "b_hh": b_hh.reshape(1, D),
        "w_c_t": w_c.T,
        "b_c": b_c.reshape(1, C),
    }


def reference_forward(x_ids, params):
    """Pure-JAX reference of the PyTorch forward for a sanity check."""
    x = jnp.take(params["embedding"], x_ids, axis=0)          # (B, L, D)
    B, L, D = x.shape
    h = jnp.zeros((B, D), jnp.float32)
    for t in range(L):
        h = jnp.tanh(x[:, t, :] @ params["w_ih_t"] + params["b_ih"]
                     + h @ params["w_hh_t"] + params["b_hh"])
    return h @ params["w_c_t"] + params["b_c"]


if __name__ == "__main__":
    # Small shapes consistent with the module: vocab=30, vector_dim=32, seq=8, batch=2.
    VOCAB, D, L, B = 30, 32, 8, 2
    key = jax.random.PRNGKey(0)
    k_param, k_data = jax.random.split(key)
    params = init_params(k_param, VOCAB, D, L)
    slab = jax.block_until_ready(pack_params(params))   # one-time init-side precompute
    x_ids = jax.random.randint(k_data, (B, L), 0, VOCAB, dtype=jnp.int32)

    forward = jax.jit(functools.partial(torch_model_forward, num_classes=L + 1))
    logits = jax.block_until_ready(forward(x_ids, slab))

    ref = reference_forward(x_ids, params)
    assert logits.shape == (B, L + 1)
    assert jnp.allclose(logits, ref, atol=1e-4, rtol=1e-4), (
        float(jnp.max(jnp.abs(logits - ref))))
    print("KERNEL_OK")
</pallas_src>

<mosaic_0001>
module attributes {stable_mosaic.version = 11 : i64} {
  func.func @rnn_classify_kernel(%arg0: memref<64x1xi32, #tpu.memory_space<vmem>>, %arg1: memref<104x32xf32, #tpu.memory_space<vmem>>, %arg2: memref<8x32xf32, #tpu.memory_space<vmem>>) attributes {dimension_semantics = [], scalar_prefetch = 0 : i64, scratch_operands = 0 : i64, tpu.core_type = #tpu.core_type<tc>} {
    %c0 = arith.constant 0 : index
    %c0_0 = arith.constant 0 : index
    %0 = vector.load %arg0[%c0, %c0_0] : memref<64x1xi32, #tpu.memory_space<vmem>>, vector<64x1xi32>
    %1 = tpu.iota {dimensions = array<i32: 1>} : vector<64x32xi32>
    %2 = vector.broadcast %0 : vector<64x1xi32> to vector<64x32xi32>
    %3 = arith.cmpi eq, %2, %1 : vector<64x32xi32>
    %4 = arith.extui %3 : vector<64x32xi1> to vector<64x32xi32>
    %5 = arith.sitofp %4 : vector<64x32xi32> to vector<64x32xf32>
    %c0_1 = arith.constant 0 : index
    %c0_2 = arith.constant 0 : index
    %6 = vector.load %arg1[%c0_1, %c0_2] : memref<104x32xf32, #tpu.memory_space<vmem>>, vector<32x32xf32>
    %cst = arith.constant dense<0.000000e+00> : vector<64x32xf32>
    %7 = tpu.matmul %5, %6, %cst {dimension_numbers = #tpu.dot_dimension_numbers<[1], [0], [0], [1], [0, 0, 1, 1], [], []>} : vector<64x32xf32>, vector<32x32xf32>, vector<64x32xf32> -> vector<64x32xf32>
    %c32 = arith.constant 32 : index
    %c0_3 = arith.constant 0 : index
    %8 = vector.load %arg1[%c32, %c0_3] : memref<104x32xf32, #tpu.memory_space<vmem>>, vector<32x32xf32>
    %9 = vector.extract_strided_slice %7 {offsets = [0, 0], sizes = [8, 32], strides = [1, 1]} : vector<64x32xf32> to vector<8x32xf32>
    %10 = math.tanh %9 : vector<8x32xf32>
    %11 = vector.extract_strided_slice %7 {offsets = [8, 0], sizes = [8, 32], strides = [1, 1]} : vector<64x32xf32> to vector<8x32xf32>
    %cst_4 = arith.constant dense<0.000000e+00> : vector<8x32xf32>
    %12 = tpu.matmul %10, %8, %cst_4 {dimension_numbers = #tpu.dot_dimension_numbers<[1], [0], [0], [1], [0, 0, 1, 1], [], []>} : vector<8x32xf32>, vector<32x32xf32>, vector<8x32xf32> -> vector<8x32xf32>
    %13 = arith.addf %11, %12 : vector<8x32xf32>
    %14 = math.tanh %13 : vector<8x32xf32>
    %15 = vector.extract_strided_slice %7 {offsets = [16, 0], sizes = [8, 32], strides = [1, 1]} : vector<64x32xf32> to vector<8x32xf32>
    %cst_5 = arith.constant dense<0.000000e+00> : vector<8x32xf32>
    %16 = tpu.matmul %14, %8, %cst_5 {dimension_numbers = #tpu.dot_dimension_numbers<[1], [0], [0], [1], [0, 0, 1, 1], [], []>} : vector<8x32xf32>, vector<32x32xf32>, vector<8x32xf32> -> vector<8x32xf32>
    %17 = arith.addf %15, %16 : vector<8x32xf32>
    %18 = math.tanh %17 : vector<8x32xf32>
    %19 = vector.extract_strided_slice %7 {offsets = [24, 0], sizes = [8, 32], strides = [1, 1]} : vector<64x32xf32> to vector<8x32xf32>
    %cst_6 = arith.constant dense<0.000000e+00> : vector<8x32xf32>
    %20 = tpu.matmul %18, %8, %cst_6 {dimension_numbers = #tpu.dot_dimension_numbers<[1], [0], [0], [1], [0, 0, 1, 1], [], []>} : vector<8x32xf32>, vector<32x32xf32>, vector<8x32xf32> -> vector<8x32xf32>
    %21 = arith.addf %19, %20 : vector<8x32xf32>
    %22 = math.tanh %21 : vector<8x32xf32>
    %23 = vector.extract_strided_slice %7 {offsets = [32, 0], sizes = [8, 32], strides = [1, 1]} : vector<64x32xf32> to vector<8x32xf32>
    %cst_7 = arith.constant dense<0.000000e+00> : vector<8x32xf32>
    %24 = tpu.matmul %22, %8, %cst_7 {dimension_numbers = #tpu.dot_dimension_numbers<[1], [0], [0], [1], [0, 0, 1, 1], [], []>} : vector<8x32xf32>, vector<32x32xf32>, vector<8x32xf32> -> vector<8x32xf32>
    %25 = arith.addf %23, %24 : vector<8x32xf32>
    %26 = math.tanh %25 : vector<8x32xf32>
    %27 = vector.extract_strided_slice %7 {offsets = [40, 0], sizes = [8, 32], strides = [1, 1]} : vector<64x32xf32> to vector<8x32xf32>
    %cst_8 = arith.constant dense<0.000000e+00> : vector<8x32xf32>
    %28 = tpu.matmul %26, %8, %cst_8 {dimension_numbers = #tpu.dot_dimension_numbers<[1], [0], [0], [1], [0, 0, 1, 1], [], []>} : vector<8x32xf32>, vector<32x32xf32>, vector<8x32xf32> -> vector<8x32xf32>
    %29 = arith.addf %27, %28 : vector<8x32xf32>
    %30 = math.tanh %29 : vector<8x32xf32>
    %31 = vector.extract_strided_slice %7 {offsets = [48, 0], sizes = [8, 32], strides = [1, 1]} : vector<64x32xf32> to vector<8x32xf32>
    %cst_9 = arith.constant dense<0.000000e+00> : vector<8x32xf32>
    %32 = tpu.matmul %30, %8, %cst_9 {dimension_numbers = #tpu.dot_dimension_numbers<[1], [0], [0], [1], [0, 0, 1, 1], [], []>} : vector<8x32xf32>, vector<32x32xf32>, vector<8x32xf32> -> vector<8x32xf32>
    %33 = arith.addf %31, %32 : vector<8x32xf32>
    %34 = math.tanh %33 : vector<8x32xf32>
    %35 = vector.extract_strided_slice %7 {offsets = [56, 0], sizes = [8, 32], strides = [1, 1]} : vector<64x32xf32> to vector<8x32xf32>
    %cst_10 = arith.constant dense<0.000000e+00> : vector<8x32xf32>
    %36 = tpu.matmul %34, %8, %cst_10 {dimension_numbers = #tpu.dot_dimension_numbers<[1], [0], [0], [1], [0, 0, 1, 1], [], []>} : vector<8x32xf32>, vector<32x32xf32>, vector<8x32xf32> -> vector<8x32xf32>
    %37 = arith.addf %35, %36 : vector<8x32xf32>
    %38 = math.tanh %37 : vector<8x32xf32>
    %c64 = arith.constant 64 : index
    %c0_11 = arith.constant 0 : index
    %39 = vector.load %arg1[%c64, %c0_11] : memref<104x32xf32, #tpu.memory_space<vmem>>, vector<32x32xf32>
    %c96 = arith.constant 96 : index
    %c0_12 = arith.constant 0 : index
    %40 = vector.load %arg1[%c96, %c0_12] : memref<104x32xf32, #tpu.memory_space<vmem>>, vector<1x32xf32>
    %cst_13 = arith.constant dense<0.000000e+00> : vector<8x32xf32>
    %41 = tpu.matmul %38, %39, %cst_13 {dimension_numbers = #tpu.dot_dimension_numbers<[1], [0], [0], [1], [0, 0, 1, 1], [], []>} : vector<8x32xf32>, vector<32x32xf32>, vector<8x32xf32> -> vector<8x32xf32>
    %42 = vector.broadcast %40 : vector<1x32xf32> to vector<8x32xf32>
    %43 = arith.addf %41, %42 : vector<8x32xf32>
    %c0_14 = arith.constant 0 : index
    %c0_15 = arith.constant 0 : index
    %44 = vector.load %arg2[%c0_14, %c0_15] : memref<8x32xf32, #tpu.memory_space<vmem>>, vector<8x32xf32>
    tpu.vector_store %arg2[%c0_14, %c0_15], %43 {strides = array<i32>} : memref<8x32xf32, #tpu.memory_space<vmem>>, vector<8x32xf32>,
    return
  }
}

</mosaic_0001>

<bundles_post_ra>
// kernel: torch_model_forward.1
= control target key start
LH: loop header
LB: loop body
LE: loop exit
PB: predicated region body
PF: predicated region fallthrough
CT: control target
= control target key end

     0   :  { %v1083_v0 = vmov 0   ;;  %v19_v14 = vlaneseq  ;;  %vm73_vm0 = vcmask 261120   ;;  %v1084_v18 = vmov 0.0   ;;  %s1253_s0 = inlined_call_operand.vmem [shape: s32[64,1], index: 0, kind: input, shape index: {}]   ;;  %s1254_s1 = inlined_call_operand.vmem [shape: f32[104,32], index: 1, kind: input, shape index: {}]   ;;  %s1255_s2 = inlined_call_operand.vmem [shape: f32[8,32], index: 2, kind: output, shape index: {}]  }
   0x1   :  { %1065 = vset.pattern.permute.xlu0 %v1083_v0  ;;  %v11_v1 = vld [vmem:[%s1253_s0] sm:$0xff]  ;;  %1066 = vset.pattern.permute.xlu1 %v1083_v0  ;;  %v13_v2 = vld [vmem:[%s1253_s0 + $0x10] sm:$0xff]  ;;  %v12_v3 = vld [vmem:[%s1253_s0 + $0x8] sm:$0xff]  ;;  %v1085_v34 = vmov 0.0|0.0   ;;  %vm1086_vm8 = vmmov 0  }
   0x2   :  { %22 = vperm.xlu0 %1065, %v11_v1   ;;  %28 = vperm.xlu1 %1066, %v13_v2   ;;  %v14_v4 = vld [vmem:[%s1253_s0 + $0x18] sm:$0xff]  ;;  %v69_v5 = vld [vmem:[%s1254_s1] sm:$0xff]  ;;  %v70_v6 = vld [vmem:[%s1254_s1 + $0x8] sm:$0xff]  ;;  %v1135_v15 = vand.u32 127, %v19_v14 }
   0x3   :  { %v1005_v7 = vpack.c.bf16 %v70_v6, %v69_v5  ;;  %v71_v8 = vld [vmem:[%s1254_s1 + $0x10] sm:$0xff]  ;;  %v72_v9 = vld [vmem:[%s1254_s1 + $0x18] sm:$0xff]  ;;  %v15_v11 = vld [vmem:[%s1253_s0 + $0x20] sm:$0xff]  ;;  %1013 = vmatprep.subr.bf16.mxu1 %v1085_v34  ;;  %925 = vmatprep.mubr.msk.f32.mxu1 %vm1086_vm8, %v1084_v18 }
   0x4   :  { %v1009_v10 = vpack.c.bf16 %v72_v9, %v71_v8  ;;  %v16_v12 = vld [vmem:[%s1253_s0 + $0x28] sm:$0xff]  ;;  %v17_v13 = vld [vmem:[%s1253_s0 + $0x30] sm:$0xff]  ;;  %v203_v31 = vld [vmem:[%s1254_s1 + $0x20] sm:$0xff] }
   0x5   :  { %1006 = vmatprep.subr.bf16.mxu0 %v1005_v7  ;;  %v204_v32 = vld [vmem:[%s1254_s1 + $0x28] sm:$0xff]  ;;  %v205_v33 = vld [vmem:[%s1254_s1 + $0x30] sm:$0xff]  ;;  %v206_v36 = vld [vmem:[%s1254_s1 + $0x38] sm:$0xff] }
   0x6   :  { %25 = vperm.xlu0 %1065, %v12_v3   ;;  %31 = vperm.xlu1 %1066, %v14_v4   ;;  %v1168_v35 = vpack.c.bf16 %v204_v32, %v203_v31  ;;  %v1177_v37 = vpack.c.bf16 %v206_v36, %v205_v33  ;;  %v18_v38 = vld [vmem:[%s1253_s0 + $0x38] sm:$0xff] }
   0x7   :  { %1008 = vmatpush3.bf16.msra.mxu0 %v1005_v7  ;;  %v736_v14 = vld [vmem:[%s1254_s1 + $0x58] sm:$0xff] }
   0x8   :  { %1010 = vmatprep.subr.bf16.mxu0 %v1009_v10  ;;  %1015 = vmatpush3.bf16.msra.mxu1 %v1168_v35 }
   0x9   :  { %1016 = vmatprep.subr.bf16.mxu1 %v1085_v34 }
   0xa   :  { %34 = vperm.xlu0 %1065, %v15_v11   ;;  %37 = vperm.xlu1 %1066, %v16_v12   ;;  %v734_v11 = vld [vmem:[%s1254_s1 + $0x48] sm:$0xff]  ;;  %v735_v12 = vld [vmem:[%s1254_s1 + $0x50] sm:$0xff] }
   0xb   :  { %1012 = vmatpush3.bf16.msra.mxu0 %v1009_v10  ;;  %v733_v10 = vld [vmem:[%s1254_s1 + $0x40] sm:$0xff] }
   0xc   :  { %1025 = vmatprep.subr.bf16.mxu0 %v1085_v34  ;;  %1018 = vmatpush3.bf16.msra.mxu1 %v1177_v37 }
   0xd   :  { %1019 = vmatprep.subr.bf16.mxu1 %v1085_v34 }
   0xe   :  { %40 = vperm.xlu0 %1065, %v17_v13   ;;  %43 = vperm.xlu1 %1066, %v18_v38   ;;  %v1056_v13 = vpack.c.bf16 %v734_v11, %v733_v10 }
  0x81   :  { %v23_v16 = vpop.permute.xlu0 %22  ;;  %v29_v17 = vpop.permute.xlu1 %28 }
  0x82   :  { %vm45_vm1 = vcmp.eq.s32.totalorder %v23_v16, %v1135_v15  ;;  %vm47_vm2 = vcmp.eq.s32.totalorder %v29_v17, %v1135_v15 }
  0x83   :  { %v820_v19 = vsel %vm45_vm1, 1.0, %v1084_v18  ;;  %v822_v22 = vsel %vm47_vm2, 1.0, %v1084_v18 }
  0x84   :  { %905 = vmatprep.mubr.msk.f32.mxu0 %vm73_vm0, %v820_v19 }
  0x85   :  { %v26_v20 = vpop.permute.xlu0 %25  ;;  %v32_v21 = vpop.permute.xlu1 %31 }
  0x86   :  { %vm46_vm3 = vcmp.eq.s32.totalorder %v26_v20, %v1135_v15  ;;  %vm48_vm4 = vcmp.eq.s32.totalorder %v32_v21, %v1135_v15  ;;  %v843_v20 = vld [vmem:[%s1254_s1 + $0x60] ss:$0 sm:$0xff] }
  0x87   :  { %v821_v23 = vsel %vm46_vm3, 1.0, %v1084_v18  ;;  %v823_v24 = vsel %vm48_vm4, 1.0, %v1084_v18 }
  0x88   :  { %906 = vmatmul.mubr.msk.f32.vlgmr.msra.gmra.mrb[0].mxu0 %vm73_vm0, %v821_v23 }
  0x89   :  { %v35_v25 = vpop.permute.xlu0 %34  ;;  %908 = vmatprep.mubr.msk.f32.mxu0 %vm73_vm0, %v822_v22  ;;  %v38_v26 = vpop.permute.xlu1 %37  ;;  %1027 = vmatpush3.bf16.msra.mxu0 %v1168_v35 }
  0x8a   :  { %vm49_vm5 = vcmp.eq.s32.totalorder %v35_v25, %v1135_v15  ;;  %vm50_vm6 = vcmp.eq.s32.totalorder %v38_v26, %v1135_v15  ;;  %1028 = vmatprep.subr.bf16.mxu0 %v1085_v34 }
  0x8b   :  { %v824_v27 = vsel %vm49_vm5, 1.0, %v1084_v18  ;;  %v825_v28 = vsel %vm50_vm6, 1.0, %v1084_v18 }
  0x8c   :  { %909 = vmatmul.mubr.msk.f32.gmra.mrb[2].mxu0 %vm73_vm0, %v823_v24 }
  0x8d   :  { %911 = vmatprep.mubr.msk.f32.mxu0 %vm73_vm0, %v824_v27  ;;  %v41_v29 = vpop.permute.xlu0 %40  ;;  %1030 = vmatpush3.bf16.msra.mxu0 %v1177_v37  ;;  %v44_v42 = vpop.permute.xlu1 %43 }
  0x8e   :  { %vm51_vm7 = vcmp.eq.s32.totalorder %v41_v29, %v1135_v15  ;;  %1037 = vmatprep.subr.bf16.mxu0 %v1085_v34  ;;  %vm52_vm9 = vcmp.eq.s32.totalorder %v44_v42, %v1135_v15  ;;  %v1059_v15 = vpack.c.bf16 %v736_v14, %v735_v12 }
  0x8f   :  { %v826_v30 = vsel %vm51_vm7, 1.0, %v1084_v18  ;;  %v827_v43 = vsel %vm52_vm9, 1.0, %v1084_v18 }
  0x90   :  { %912 = vmatmul.mubr.msk.f32.gmra.mrb[4].mxu0 %vm73_vm0, %v825_v28 }
  0x91   :  { %914 = vmatprep.mubr.msk.f32.mxu0 %vm73_vm0, %v826_v30 }
  0x94   :  { %915 = vmatmul.mubr.msk.f32.gmra.mrb[6].mxu0 %vm73_vm0, %v827_v43 }
  0x95   :  { %947 = vmatprep.mubr.msk.f32.mxu0 %vm1086_vm8, %v1084_v18 }
 0x15b   :  { %v907_v39 = vpop.f32.mrb[0].mxu0 }
 0x15c   :  { %v164_v40 = vpop.f32.mrb[1].mxu0 }
 0x15d   :  { %1067 = vtanh.f32 %v164_v40 }
 0x15f   :  { %v910_v44 = vpop.f32.mrb[2].mxu0 }
 0x160   :  { %v174_v45 = vpop.f32.mrb[3].mxu0 }
 0x163   :  { %v913_v46 = vpop.f32.mrb[4].mxu0 }
 0x164   :  { %v184_v47 = vpop.f32.mrb[5].mxu0 }
 0x167   :  { %v1068_v41 = vpop.eup %1067  ;;  %v916_v52 = vpop.f32.mrb[6].mxu0 }
 0x168   :  { %926 = vmatmul.mubr.msk.f32.vlgmr.msra.gmra.mrb[0].mxu1 %vm73_vm0, %v1068_v41  ;;  %v194_v53 = vpop.f32.mrb[7].mxu0 }
 0x169   :  { %1021 = vmatpush3.bf16.msra.mxu1 %v1168_v35  ;;  %936 = vmatprep.mubr.msk.f32.mxu1 %vm1086_vm8, %v1084_v18 }
 0x16a   :  { %1022 = vmatprep.subr.bf16.mxu1 %v1085_v34 }
 0x16d   :  { %1024 = vmatpush3.bf16.msra.mxu1 %v1177_v37 }
 0x16e   :  { %1031 = vmatprep.subr.bf16.mxu1 %v1085_v34 }
 0x23b   :  { %v277_v48 = vpop.f32.mrb[0].mxu1 }
 0x23c   :  { %v281_v49 = vadd.f32 %v907_v39, %v277_v48  ;;  %v927_v50 = vpop.f32.mrb[1].mxu1 }
 0x23e   :  { %1069 = vtanh.f32 %v281_v49 }
 0x248   :  { %v1070_v51 = vpop.eup %1069 }
 0x249   :  { %937 = vmatmul.mubr.msk.f32.vlgmr.msra.gmra.mrb[2].mxu1 %vm73_vm0, %v1070_v51 }
 0x24a   :  { %1033 = vmatpush3.bf16.msra.mxu1 %v1168_v35  ;;  %958 = vmatprep.mubr.msk.f32.mxu1 %vm1086_vm8, %v1084_v18 }
 0x24b   :  { %1034 = vmatprep.subr.bf16.mxu1 %v1085_v34 }
 0x24e   :  { %1036 = vmatpush3.bf16.msra.mxu1 %v1177_v37 }
 0x24f   :  { %1043 = vmatprep.subr.bf16.mxu1 %v1085_v34 }
 0x31c   :  { %v352_v54 = vpop.f32.mrb[2].mxu1 }
 0x31d   :  { %v356_v55 = vadd.f32 %v352_v54, %v174_v45  ;;  %v938_v56 = vpop.f32.mrb[3].mxu1 }
 0x31f   :  { %1071 = vtanh.f32 %v356_v55 }
 0x329   :  { %v1072_v57 = vpop.eup %1071 }
 0x32a   :  { %948 = vmatmul.mubr.msk.f32.vlgmr.msra.gmra.mrb[8].mxu0 %vm73_vm0, %v1072_v57 }
 0x32b   :  { %1039 = vmatpush3.bf16.msra.mxu0 %v1168_v35  ;;  %969 = vmatprep.mubr.msk.f32.mxu0 %vm1086_vm8, %v1084_v18 }
 0x32c   :  { %1040 = vmatprep.subr.bf16.mxu0 %v1085_v34 }
 0x32f   :  { %1042 = vmatpush3.bf16.msra.mxu0 %v1177_v37 }
 0x330   :  { %1049 = vmatprep.subr.bf16.mxu0 %v1085_v34 }
 0x3fd   :  { %v427_v58 = vpop.f32.mrb[8].mxu0 }
 0x3fe   :  { %v431_v59 = vadd.f32 %v910_v44, %v427_v58  ;;  %v949_v60 = vpop.f32.mrb[9].mxu0 }
 0x400   :  { %1073 = vtanh.f32 %v431_v59 }
 0x40a   :  { %v1074_v61 = vpop.eup %1073 }
 0x40b   :  { %959 = vmatmul.mubr.msk.f32.vlgmr.msra.gmra.mrb[4].mxu1 %vm73_vm0, %v1074_v61 }
 0x40c   :  { %1045 = vmatpush3.bf16.msra.mxu1 %v1168_v35  ;;  %980 = vmatprep.mubr.msk.f32.mxu1 %vm1086_vm8, %v1084_v18 }
 0x40d   :  { %1046 = vmatprep.subr.bf16.mxu1 %v1085_v34 }
 0x410   :  { %1048 = vmatpush3.bf16.msra.mxu1 %v1177_v37 }
 0x411   :  { %1055 = vmatprep.subr.bf16.mxu1 %v1085_v34 }
 0x4de   :  { %v502_v62 = vpop.f32.mrb[4].mxu1 }
 0x4df   :  { %v506_v63 = vadd.f32 %v502_v62, %v184_v47  ;;  %v960_v0 = vpop.f32.mrb[5].mxu1 }
 0x4e1   :  { %1075 = vtanh.f32 %v506_v63 }
 0x4eb   :  { %v1076_v1 = vpop.eup %1075 }
 0x4ec   :  { %970 = vmatmul.mubr.msk.f32.vlgmr.msra.gmra.mrb[10].mxu0 %vm73_vm0, %v1076_v1 }
 0x4ed   :  { %1051 = vmatpush3.bf16.msra.mxu0 %v1168_v35  ;;  %991 = vmatprep.mubr.msk.f32.mxu0 %vm1086_vm8, %v1084_v18 }
 0x4ee   :  { %1052 = vmatprep.subr.bf16.mxu0 %v1085_v34 }
 0x4f1   :  { %1054 = vmatpush3.bf16.msra.mxu0 %v1177_v37 }
 0x5bf   :  { %v577_v2 = vpop.f32.mrb[10].mxu0 }
 0x5c0   :  { %v581_v3 = vadd.f32 %v913_v46, %v577_v2  ;;  %v971_v4 = vpop.f32.mrb[11].mxu0 }
 0x5c2   :  { %1077 = vtanh.f32 %v581_v3 }
 0x5cc   :  { %v1078_v5 = vpop.eup %1077 }
 0x5cd   :  { %981 = vmatmul.mubr.msk.f32.vlgmr.msra.gmra.mrb[6].mxu1 %vm73_vm0, %v1078_v5 }
 0x5ce   :  { %1002 = vmatprep.mubr.msk.f32.mxu1 %vm1086_vm8, %v1084_v18  ;;  %1057 = vmatpush3.bf16.msra.mxu1 %v1056_v13 }
 0x5cf   :  { %1058 = vmatprep.subr.bf16.mxu1 %v1085_v34 }
 0x5d2   :  { %1060 = vmatpush3.bf16.msra.mxu1 %v1059_v15 }
 0x6a0   :  { %v652_v6 = vpop.f32.mrb[6].mxu1 }
 0x6a1   :  { %v656_v7 = vadd.f32 %v652_v6, %v194_v53  ;;  %v982_v8 = vpop.f32.mrb[7].mxu1 }
 0x6a3   :  { %1079 = vtanh.f32 %v656_v7 }
 0x6ad   :  { %v1080_v9 = vpop.eup %1079 }
 0x6ae   :  { %992 = vmatmul.mubr.msk.f32.vlgmr.msra.gmra.mrb[12].mxu0 %vm73_vm0, %v1080_v9 }
 0x781   :  { %v727_v16 = vpop.f32.mrb[12].mxu0 }
 0x782   :  { %v731_v17 = vadd.f32 %v916_v52, %v727_v16  ;;  %v993_v18 = vpop.f32.mrb[13].mxu0 }
 0x784   :  { %1081 = vtanh.f32 %v731_v17 }
 0x78e   :  { %v1082_v19 = vpop.eup %1081 }
 0x78f   :  { %1003 = vmatmul.mubr.msk.f32.vlgmr.msra.gmra.mrb[8].mxu1 %vm73_vm0, %v1082_v19 }
 0x862   :  { %v811_v21 = vpop.f32.mrb[8].mxu1 }
 0x863   :  { %v812_v22 = vadd.f32 %v843_v20, %v811_v21  ;;  %v1004_v23 = vpop.f32.mrb[9].mxu1 }
 0x865   :  { %815 = vst.msk [vmem:[%s1255_s2] sm:$0xff] %vm73_vm0, %v812_v22 }

</bundles_post_ra>
